<compile_context>
chip_gen: v7x
topology: tpu7x:2x2x1
jax: 0.10.0
libtpu: 0.0.40
codegen_flags: <defaults>
</compile_context>

<pallas_src>
import functools

import jax
import jax.numpy as jnp
from jax.experimental import pallas as pl
from jax.experimental.pallas import tpu as pltpu

BN_EPS = 1e-5
FEATS_IN, H1, H2 = 392, 200, 84
_VMEM_LIMIT = 32 * 1024 * 1024


def _round_up(n, m):
    return ((n + m - 1) // m) * m


# --------------------------------------------------------------------------
# Phase A: x -> h1 = relu(x @ W1 + b1); full-batch BN1 stats -> [scale; shift]
# --------------------------------------------------------------------------
def _phase_a_kernel(x_ref, w1_ref, p1_ref,            # inputs
                    h1_ref, norm1_ref,                  # outputs
                    stat_ref,                           # VMEM scratch
                    *, batch, block_b):
    t = pl.program_id(0)
    n = pl.num_programs(0)

    @pl.when(t == 0)
    def _():
        stat_ref[...] = jnp.zeros_like(stat_ref)

    b1, g1, be1 = p1_ref[0:1, :], p1_ref[1:2, :], p1_ref[2:3, :]

    # bf16 MXU path; x is streamed from HBM once as f32 and cast in VMEM.
    x_bf = x_ref[...].astype(jnp.bfloat16)
    a1 = jnp.maximum(
        jnp.dot(x_bf, w1_ref[...], preferred_element_type=jnp.float32) + b1,
        0.0)
    a1_bf = a1.astype(jnp.bfloat16)
    h1_ref[...] = a1_bf                                  # spill h1 (bf16)

    # Accumulate BN stats from the *stored* (bf16-rounded) values so phase B
    # normalizes exactly the distribution these stats describe.  Zero-padded
    # rows (batch not a multiple of the tile) are masked out of the stats.
    a1s = a1_bf.astype(jnp.float32)
    if batch % block_b != 0:
        row = t * block_b + jax.lax.broadcasted_iota(jnp.int32, (block_b, 1), 0)
        a1s = jnp.where(row < batch, a1s, 0.0)
    stat_ref[0:1, :] += jnp.sum(a1s, axis=0, keepdims=True)
    stat_ref[1:2, :] += jnp.sum(a1s * a1s, axis=0, keepdims=True)

    @pl.when(t == n - 1)
    def _():
        inv_b = 1.0 / batch
        mean = stat_ref[0:1, :] * inv_b
        var = stat_ref[1:2, :] * inv_b - mean * mean     # biased var (training BN)
        scale = g1 * jax.lax.rsqrt(var + BN_EPS)
        norm1_ref[0:1, :] = scale
        norm1_ref[1:2, :] = be1 - mean * scale


# --------------------------------------------------------------------------
# Phase B: h1 -> h2 = relu(BN1(h1) @ W2 + b2); BN2 stats folded into the head
# --------------------------------------------------------------------------
def _phase_b_kernel(h1_ref, norm1_ref, w2_ref, p2_ref,  # inputs
                    h2_ref, fold_ref,                     # outputs
                    stat_ref,                             # VMEM scratch
                    *, batch, block_b):
    t = pl.program_id(0)
    n = pl.num_programs(0)

    @pl.when(t == 0)
    def _():
        stat_ref[...] = jnp.zeros_like(stat_ref)

    b2, g2, be2 = p2_ref[0:1, :], p2_ref[1:2, :], p2_ref[2:3, :]

    # BN1 (global scale/shift from phase A) in f32, then Linear(200,84)+ReLU.
    y1 = h1_ref[...].astype(jnp.float32) * norm1_ref[0:1, :] + norm1_ref[1:2, :]
    a2 = jnp.maximum(
        jnp.dot(y1.astype(jnp.bfloat16), w2_ref[...],
                preferred_element_type=jnp.float32) + b2,
        0.0)
    a2_bf = a2.astype(jnp.bfloat16)
    h2_ref[...] = a2_bf                                   # spill h2 (bf16)

    a2s = a2_bf.astype(jnp.float32)
    if batch % block_b != 0:
        row = t * block_b + jax.lax.broadcasted_iota(jnp.int32, (block_b, 1), 0)
        a2s = jnp.where(row < batch, a2s, 0.0)
    stat_ref[0:1, :] += jnp.sum(a2s, axis=0, keepdims=True)
    stat_ref[1:2, :] += jnp.sum(a2s * a2s, axis=0, keepdims=True)

    @pl.when(t == n - 1)
    def _():
        inv_b = 1.0 / batch
        mean = stat_ref[0:1, :] * inv_b
        var = stat_ref[1:2, :] * inv_b - mean * mean
        scale2 = g2 * jax.lax.rsqrt(var + BN_EPS)
        shift2 = be2 - mean * scale2
        w3 = p2_ref[3:4, :]
        b3 = p2_ref[4:5, 0:1]
        # Fold BN2 into the 84->1 head:
        #   logits = h2 · (w3*scale2) + (w3·shift2 + b3)
        fold_ref[0:1, :] = w3 * scale2
        fold_ref[1:2, :] = jnp.broadcast_to(
            jnp.sum(w3 * shift2, axis=-1, keepdims=True) + b3, (1, H2))


# --------------------------------------------------------------------------
# Phase C: h2 -> sigmoid(h2 · w3_eff + b_eff), lane-dense (1, tb) output blocks
# --------------------------------------------------------------------------
def _phase_c_kernel(h2_ref, fold_ref, o_ref):
    h2 = h2_ref[...].astype(jnp.float32)                  # (tb, 84)
    w3_eff = fold_ref[0:1, :]                             # (1, 84)
    b_eff = fold_ref[1:2, 0:1]                            # (1, 1)
    # (1,84) x (tb,84)^T -> (1,tb): result lands lane-major, no transpose and
    # no lane-width-1 masked stores.
    logits = jax.lax.dot_general(
        w3_eff, h2, (((1,), (1,)), ((), ())),
        preferred_element_type=jnp.float32) + b_eff
    o_ref[...] = jax.nn.sigmoid(logits)


# --------------------------------------------------------------------------
# Wrapper
# --------------------------------------------------------------------------
@functools.partial(jax.jit, static_argnames=("block_b",))
def mlpnet_forward(x, params, *, block_b=2048):
    """x: (B, 2, 14, 14) NCHW (any shape whose trailing dims flatten to 392).

    block_b: batch-tile upper bound.  2048 amortizes per-grid-step overhead and
    fits the 32 MiB scoped VMEM budget on v5e/v6e/v7x; when B is small the tile
    shrinks to one sublane-aligned tile.
    """
    w1, p1, w2, p2 = params
    B = x.shape[0]
    x2d = x.reshape(B, FEATS_IN).astype(jnp.float32)      # == torch .view(-1, 392)

    r8 = _round_up(B, 8)
    if r8 <= block_b:
        tb = r8                        # single tile: block dims == array dims
    else:
        tb = _round_up(block_b, 128)   # streaming tile: sublane/lane aligned
    b_pad = _round_up(B, tb)
    if b_pad != B:
        x2d = jnp.pad(x2d, ((0, b_pad - B), (0, 0)))      # masked in-kernel
    n_tiles = b_pad // tb

    w1_bf = w1.astype(jnp.bfloat16)
    w2_bf = w2.astype(jnp.bfloat16)

    seq_params = pltpu.CompilerParams(
        dimension_semantics=("arbitrary",),               # cross-tile BN stats
        vmem_limit_bytes=_VMEM_LIMIT)
    par_params = pltpu.CompilerParams(
        dimension_semantics=("parallel",),                # no cross-tile state
        vmem_limit_bytes=_VMEM_LIMIT)

    # ---- Phase A: x -> h1 (bf16 spill) + BN1 [scale; shift] ----
    h1, norm1 = pl.pallas_call(
        functools.partial(_phase_a_kernel, batch=B, block_b=tb),
        grid=(n_tiles,),
        in_specs=[
            pl.BlockSpec((tb, FEATS_IN), lambda t: (t, 0)),   # x: streamed
            pl.BlockSpec((FEATS_IN, H1), lambda t: (0, 0)),   # w1: resident
            pl.BlockSpec((3, H1), lambda t: (0, 0)),          # [b1; g1; be1]
        ],
        out_specs=[
            pl.BlockSpec((tb, H1), lambda t: (t, 0)),         # h1 spill
            pl.BlockSpec((2, H1), lambda t: (0, 0)),          # BN1 scale/shift
        ],
        out_shape=[
            jax.ShapeDtypeStruct((b_pad, H1), jnp.bfloat16),
            jax.ShapeDtypeStruct((2, H1), jnp.float32),
        ],
        scratch_shapes=[pltpu.VMEM((2, H1), jnp.float32)],    # [sum; sumsq]
        compiler_params=seq_params,
    )(x2d, w1_bf, p1)

    # ---- Phase B: h1 -> h2 (bf16 spill) + folded head [w3_eff; b_eff] ----
    h2, fold = pl.pallas_call(
        functools.partial(_phase_b_kernel, batch=B, block_b=tb),
        grid=(n_tiles,),
        in_specs=[
            pl.BlockSpec((tb, H1), lambda t: (t, 0)),         # h1: streamed
            pl.BlockSpec((2, H1), lambda t: (0, 0)),          # BN1 scale/shift
            pl.BlockSpec((H1, H2), lambda t: (0, 0)),         # w2: resident
            pl.BlockSpec((5, H2), lambda t: (0, 0)),          # [b2; g2; be2; w3; b3]
        ],
        out_specs=[
            pl.BlockSpec((tb, H2), lambda t: (t, 0)),         # h2 spill
            pl.BlockSpec((2, H2), lambda t: (0, 0)),          # [w3_eff; b_eff]
        ],
        out_shape=[
            jax.ShapeDtypeStruct((b_pad, H2), jnp.bfloat16),
            jax.ShapeDtypeStruct((2, H2), jnp.float32),
        ],
        scratch_shapes=[pltpu.VMEM((2, H2), jnp.float32)],
        compiler_params=seq_params,
    )(h1, norm1, w2_bf, p2)

    # ---- Phase C: h2 -> sigmoid probabilities, lane-dense row ----
    out_row = pl.pallas_call(
        _phase_c_kernel,
        grid=(n_tiles,),
        in_specs=[
            pl.BlockSpec((tb, H2), lambda t: (t, 0)),         # h2: streamed
            pl.BlockSpec((2, H2), lambda t: (0, 0)),          # folded head
        ],
        out_specs=pl.BlockSpec((1, tb), lambda t: (0, t)),
        out_shape=jax.ShapeDtypeStruct((1, b_pad), jnp.float32),
        compiler_params=par_params,
    )(h2, fold)

    return out_row[0, :B].reshape(B, 1)


def init_params(key):
    """nn.Linear / BatchNorm1d default init, packed for the kernels.

    Returns (w1, p1, w2, p2):
      w1: (392, 200) Linear1 weight, pre-transposed to (in, out)
      p1: (3, 200)   rows = [b1, gamma1, beta1]
      w2: (200, 84)  Linear2 weight, pre-transposed
      p2: (5, 84)    rows = [b2, gamma2, beta2, w3_row, b3 (col 0, rest 0)]
    """
    k1, k2, k3, k4, k5, k6 = jax.random.split(key, 6)

    def uni(k, shape, fan_in):
        bound = 1.0 / (fan_in ** 0.5)
        return jax.random.uniform(k, shape, jnp.float32, -bound, bound)

    w1 = uni(k1, (FEATS_IN, H1), FEATS_IN)
    b1 = uni(k2, (H1,), FEATS_IN)
    w2 = uni(k3, (H1, H2), H1)
    b2 = uni(k4, (H2,), H1)
    w3 = uni(k5, (H2,), H2)
    b3 = uni(k6, (1,), H2)

    g1, be1 = jnp.ones((H1,), jnp.float32), jnp.zeros((H1,), jnp.float32)
    g2, be2 = jnp.ones((H2,), jnp.float32), jnp.zeros((H2,), jnp.float32)

    p1 = jnp.stack([b1, g1, be1], axis=0)                     # (3, 200)
    b3_row = jnp.zeros((H2,), jnp.float32).at[0].set(b3[0])
    p2 = jnp.stack([b2, g2, be2, w3, b3_row], axis=0)         # (5, 84)
    return w1, p1, w2, p2


def reference_forward(x, params):
    """Pure-f32 JAX reference matching the PyTorch module (training-mode BN)."""
    w1, p1, w2, p2 = params
    b1, g1, be1 = p1[0], p1[1], p1[2]
    b2, g2, be2, w3, b3 = p2[0], p2[1], p2[2], p2[3], p2[4, 0]

    h = x.reshape(x.shape[0], FEATS_IN).astype(jnp.float32)
    h = jnp.maximum(h @ w1 + b1, 0.0)
    h = (h - h.mean(0)) * jax.lax.rsqrt(h.var(0) + BN_EPS) * g1 + be1
    h = jnp.maximum(h @ w2 + b2, 0.0)
    h = (h - h.mean(0)) * jax.lax.rsqrt(h.var(0) + BN_EPS) * g2 + be2
    logits = jnp.sum(h * w3, axis=-1, keepdims=True) + b3
    return jax.nn.sigmoid(logits)


if __name__ == "__main__":
    key = jax.random.PRNGKey(0)
    k_param, k_x = jax.random.split(key)
    params = init_params(k_param)

    # NCHW input: (batch=8, channels=2, 14x14) -> flattens to 392 features.
    x = jax.random.normal(k_x, (8, 2, 14, 14), dtype=jnp.float32)
    out = jax.block_until_ready(mlpnet_forward(x, params))
    ref = reference_forward(x, params)
    assert out.shape == (8, 1), out.shape
    # bf16 MXU path + bf16 h1/h2 spills: ~1e-3 abs on sigmoid outputs vs the
    # pure-f32 reference; 2e-2 still catches structural bugs (BN, bias, ...).
    err = float(jnp.max(jnp.abs(out - ref)))
    assert err < 2e-2, f"max abs err {err}"

    # Multi-tile + padded-batch path: B=300, tb=128 -> 3 tiles, 84 masked rows
    # excluded from the BN statistics.
    x2 = jax.random.normal(jax.random.PRNGKey(1), (300, 2, 14, 14), dtype=jnp.float32)
    out2 = jax.block_until_ready(mlpnet_forward(x2, params, block_b=128))
    ref2 = reference_forward(x2, params)
    assert out2.shape == (300, 1), out2.shape
    err2 = float(jnp.max(jnp.abs(out2 - ref2)))
    assert err2 < 2e-2, f"max abs err {err2}"

    print("KERNEL_OK")
</pallas_src>

<mosaic_0001>
module attributes {stable_mosaic.version = 11 : i64} {
  func.func @_phase_a_kernel(%arg0: i32, %arg1: memref<8x392xf32, #tpu.memory_space<vmem>>, %arg2: memref<392x200xbf16, #tpu.memory_space<vmem>>, %arg3: memref<3x200xf32, #tpu.memory_space<vmem>>, %arg4: memref<8x200xbf16, #tpu.memory_space<vmem>>, %arg5: memref<2x200xf32, #tpu.memory_space<vmem>>, %arg6: memref<2x200xf32, #tpu.memory_space<vmem>>) attributes {dimension_semantics = [#tpu.dimension_semantics<arbitrary>], iteration_bounds = array<i64: 1>, scalar_prefetch = 0 : i64, scratch_operands = 1 : i64, tpu.core_type = #tpu.core_type<tc>, window_params = [{transform_indices = @transform_0, window_bounds = array<i64: 8, 392>}, {pipeline_mode = #tpu.pipeline_mode<synchronous>, transform_indices = @transform_1, window_bounds = array<i64: 392, 200>}, {pipeline_mode = #tpu.pipeline_mode<synchronous>, transform_indices = @transform_2, window_bounds = array<i64: 3, 200>}, {transform_indices = @transform_3, window_bounds = array<i64: 8, 200>}, {pipeline_mode = #tpu.pipeline_mode<synchronous>, transform_indices = @transform_4, window_bounds = array<i64: 2, 200>}]} {
    %c0_i32 = arith.constant 0 : i32
    %0 = arith.cmpi eq, %arg0, %c0_i32 : i32
    %1 = arith.extui %0 : i1 to i32
    %c0_i32_0 = arith.constant 0 : i32
    %2 = arith.cmpi ne, %1, %c0_i32_0 : i32
    scf.if %2 {
      %cst_23 = arith.constant 0.000000e+00 : f32
      %31 = vector.broadcast %cst_23 : f32 to vector<2x200xf32>
      %c0_24 = arith.constant 0 : index
      %c0_25 = arith.constant 0 : index
      %32 = vector.load %arg6[%c0_24, %c0_25] : memref<2x200xf32, #tpu.memory_space<vmem>>, vector<2x200xf32>
      tpu.vector_store %arg6[%c0_24, %c0_25], %31 {strides = array<i32>} : memref<2x200xf32, #tpu.memory_space<vmem>>, vector<2x200xf32>,
    } else {
    }
    %c0 = arith.constant 0 : index
    %c0_1 = arith.constant 0 : index
    %3 = vector.load %arg3[%c0, %c0_1] : memref<3x200xf32, #tpu.memory_space<vmem>>, vector<1x200xf32>
    %c1 = arith.constant 1 : index
    %c0_2 = arith.constant 0 : index
    %4 = vector.load %arg3[%c1, %c0_2] : memref<3x200xf32, #tpu.memory_space<vmem>>, vector<1x200xf32>
    %c2 = arith.constant 2 : index
    %c0_3 = arith.constant 0 : index
    %5 = vector.load %arg3[%c2, %c0_3] : memref<3x200xf32, #tpu.memory_space<vmem>>, vector<1x200xf32>
    %c0_4 = arith.constant 0 : index
    %c0_5 = arith.constant 0 : index
    %6 = vector.load %arg1[%c0_4, %c0_5] : memref<8x392xf32, #tpu.memory_space<vmem>>, vector<8x392xf32>
    %7 = arith.truncf %6 : vector<8x392xf32> to vector<8x392xbf16>
    %c0_6 = arith.constant 0 : index
    %c0_7 = arith.constant 0 : index
    %8 = vector.load %arg2[%c0_6, %c0_7] : memref<392x200xbf16, #tpu.memory_space<vmem>>, vector<392x200xbf16>
    %cst = arith.constant dense<0.000000e+00> : vector<8x200xf32>
    %9 = tpu.matmul %7, %8, %cst {dimension_numbers = #tpu.dot_dimension_numbers<[1], [0], [0], [1], [0, 0, 1, 1], [], []>} : vector<8x392xbf16>, vector<392x200xbf16>, vector<8x200xf32> -> vector<8x200xf32>
    %10 = vector.broadcast %3 : vector<1x200xf32> to vector<8x200xf32>
    %11 = arith.addf %9, %10 : vector<8x200xf32>
    %cst_8 = arith.constant 0.000000e+00 : f32
    %12 = vector.broadcast %cst_8 : f32 to vector<8x200xf32>
    %13 = arith.maximumf %11, %12 : vector<8x200xf32>
    %14 = arith.truncf %13 : vector<8x200xf32> to vector<8x200xbf16>
    %c0_9 = arith.constant 0 : index
    %c0_10 = arith.constant 0 : index
    %15 = vector.load %arg4[%c0_9, %c0_10] : memref<8x200xbf16, #tpu.memory_space<vmem>>, vector<8x200xbf16>
    tpu.vector_store %arg4[%c0_9, %c0_10], %14 {strides = array<i32>} : memref<8x200xbf16, #tpu.memory_space<vmem>>, vector<8x200xbf16>,
    %16 = arith.extf %14 : vector<8x200xbf16> to vector<8x200xf32>
    %c0_11 = arith.constant 0 : index
    %c0_12 = arith.constant 0 : index
    %17 = vector.load %arg6[%c0_11, %c0_12] : memref<2x200xf32, #tpu.memory_space<vmem>>, vector<1x200xf32>
    %cst_13 = arith.constant dense<0.000000e+00> : vector<200xf32>
    %18 = vector.multi_reduction <add>, %16, %cst_13 [0] : vector<8x200xf32> to vector<200xf32>
    %19 = vector.shape_cast %18 : vector<200xf32> to vector<1x200xf32>
    %20 = arith.addf %17, %19 : vector<1x200xf32>
    %c0_14 = arith.constant 0 : index
    %c0_15 = arith.constant 0 : index
    %21 = vector.load %arg6[%c0_14, %c0_15] : memref<2x200xf32, #tpu.memory_space<vmem>>, vector<1x200xf32>
    tpu.vector_store %arg6[%c0_14, %c0_15], %20 {strides = array<i32>} : memref<2x200xf32, #tpu.memory_space<vmem>>, vector<1x200xf32>,
    %c1_16 = arith.constant 1 : index
    %c0_17 = arith.constant 0 : index
    %22 = vector.load %arg6[%c1_16, %c0_17] : memref<2x200xf32, #tpu.memory_space<vmem>>, vector<1x200xf32>
    %23 = arith.mulf %16, %16 : vector<8x200xf32>
    %cst_18 = arith.constant dense<0.000000e+00> : vector<200xf32>
    %24 = vector.multi_reduction <add>, %23, %cst_18 [0] : vector<8x200xf32> to vector<200xf32>
    %25 = vector.shape_cast %24 : vector<200xf32> to vector<1x200xf32>
    %26 = arith.addf %22, %25 : vector<1x200xf32>
    %c1_19 = arith.constant 1 : index
    %c0_20 = arith.constant 0 : index
    %27 = vector.load %arg6[%c1_19, %c0_20] : memref<2x200xf32, #tpu.memory_space<vmem>>, vector<1x200xf32>
    tpu.vector_store %arg6[%c1_19, %c0_20], %26 {strides = array<i32>} : memref<2x200xf32, #tpu.memory_space<vmem>>, vector<1x200xf32>,
    %c0_i32_21 = arith.constant 0 : i32
    %28 = arith.cmpi eq, %arg0, %c0_i32_21 : i32
    %29 = arith.extui %28 : i1 to i32
    %c0_i32_22 = arith.constant 0 : i32
    %30 = arith.cmpi ne, %29, %c0_i32_22 : i32
    scf.if %30 {
      %c0_23 = arith.constant 0 : index
      %c0_24 = arith.constant 0 : index
      %31 = vector.load %arg6[%c0_23, %c0_24] : memref<2x200xf32, #tpu.memory_space<vmem>>, vector<1x200xf32>
      %cst_25 = arith.constant 1.250000e-01 : f32
      %32 = vector.broadcast %cst_25 : f32 to vector<1x200xf32>
      %33 = arith.mulf %31, %32 : vector<1x200xf32>
      %c1_26 = arith.constant 1 : index
      %c0_27 = arith.constant 0 : index
      %34 = vector.load %arg6[%c1_26, %c0_27] : memref<2x200xf32, #tpu.memory_space<vmem>>, vector<1x200xf32>
      %cst_28 = arith.constant 1.250000e-01 : f32
      %35 = vector.broadcast %cst_28 : f32 to vector<1x200xf32>
      %36 = arith.mulf %34, %35 : vector<1x200xf32>
      %37 = arith.mulf %33, %33 : vector<1x200xf32>
      %38 = arith.subf %36, %37 : vector<1x200xf32>
      %cst_29 = arith.constant 9.99999974E-6 : f32
      %39 = vector.broadcast %cst_29 : f32 to vector<1x200xf32>
      %40 = arith.addf %38, %39 : vector<1x200xf32>
      %41 = math.rsqrt %40 : vector<1x200xf32>
      %42 = arith.mulf %4, %41 : vector<1x200xf32>
      %c0_30 = arith.constant 0 : index
      %c0_31 = arith.constant 0 : index
      %43 = vector.load %arg5[%c0_30, %c0_31] : memref<2x200xf32, #tpu.memory_space<vmem>>, vector<1x200xf32>
      tpu.vector_store %arg5[%c0_30, %c0_31], %42 {strides = array<i32>} : memref<2x200xf32, #tpu.memory_space<vmem>>, vector<1x200xf32>,
      %44 = arith.mulf %33, %42 : vector<1x200xf32>
      %45 = arith.subf %5, %44 : vector<1x200xf32>
      %c1_32 = arith.constant 1 : index
      %c0_33 = arith.constant 0 : index
      %46 = vector.load %arg5[%c1_32, %c0_33] : memref<2x200xf32, #tpu.memory_space<vmem>>, vector<1x200xf32>
      tpu.vector_store %arg5[%c1_32, %c0_33], %45 {strides = array<i32>} : memref<2x200xf32, #tpu.memory_space<vmem>>, vector<1x200xf32>,
    } else {
    }
    return
  }
  func.func @transform_0(%arg0: i32) -> (i32, i32) {
    %c0_i32 = arith.constant 0 : i32
    %c0_i32_0 = arith.constant 0 : i32
    return %arg0, %c0_i32 : i32, i32
  }
  func.func @transform_1(%arg0: i32) -> (i32, i32) {
    %c0_i32 = arith.constant 0 : i32
    %c0_i32_0 = arith.constant 0 : i32
    %c0_i32_1 = arith.constant 0 : i32
    return %c0_i32, %c0_i32_0 : i32, i32
  }
  func.func @transform_2(%arg0: i32) -> (i32, i32) {
    %c0_i32 = arith.constant 0 : i32
    %c0_i32_0 = arith.constant 0 : i32
    %c0_i32_1 = arith.constant 0 : i32
    return %c0_i32, %c0_i32_0 : i32, i32
  }
  func.func @transform_3(%arg0: i32) -> (i32, i32) {
    %c0_i32 = arith.constant 0 : i32
    %c0_i32_0 = arith.constant 0 : i32
    return %arg0, %c0_i32 : i32, i32
  }
  func.func @transform_4(%arg0: i32) -> (i32, i32) {
    %c0_i32 = arith.constant 0 : i32
    %c0_i32_0 = arith.constant 0 : i32
    %c0_i32_1 = arith.constant 0 : i32
    return %c0_i32, %c0_i32_0 : i32, i32
  }
}

module attributes {stable_mosaic.version = 11 : i64} {
  func.func @_phase_c_kernel(%arg0: i32, %arg1: memref<8x84xbf16, #tpu.memory_space<vmem>>, %arg2: memref<2x84xf32, #tpu.memory_space<vmem>>, %arg3: memref<1x8xf32, #tpu.memory_space<vmem>>) attributes {dimension_semantics = [#tpu.dimension_semantics<parallel>], iteration_bounds = array<i64: 1>, scalar_prefetch = 0 : i64, scratch_operands = 0 : i64, tpu.core_type = #tpu.core_type<tc>, window_params = [{transform_indices = @transform_0, window_bounds = array<i64: 8, 84>}, {pipeline_mode = #tpu.pipeline_mode<synchronous>, transform_indices = @transform_1, window_bounds = array<i64: 2, 84>}, {transform_indices = @transform_2, window_bounds = array<i64: 1, 8>}]} {
    %c0 = arith.constant 0 : index
    %c0_0 = arith.constant 0 : index
    %0 = vector.load %arg1[%c0, %c0_0] : memref<8x84xbf16, #tpu.memory_space<vmem>>, vector<8x84xbf16>
    %1 = arith.extf %0 : vector<8x84xbf16> to vector<8x84xf32>
    %c0_1 = arith.constant 0 : index
    %c0_2 = arith.constant 0 : index
    %2 = vector.load %arg2[%c0_1, %c0_2] : memref<2x84xf32, #tpu.memory_space<vmem>>, vector<1x84xf32>
    %c1 = arith.constant 1 : index
    %c0_3 = arith.constant 0 : index
    %3 = vector.load %arg2[%c1, %c0_3] : memref<2x84xf32, #tpu.memory_space<vmem>>, vector<1x1xf32>
    %cst = arith.constant dense<0.000000e+00> : vector<1x8xf32>
    %4 = tpu.matmul %2, %1, %cst {dimension_numbers = #tpu.dot_dimension_numbers<[1], [1], [0], [0], [0, 0, 1, 0], [], []>} : vector<1x84xf32>, vector<8x84xf32>, vector<1x8xf32> -> vector<1x8xf32>
    %5 = vector.broadcast %3 : vector<1x1xf32> to vector<1x8xf32>
    %6 = arith.addf %4, %5 : vector<1x8xf32>
    %7 = arith.negf %6 : vector<1x8xf32>
    %8 = math.exp %7 : vector<1x8xf32>
    %cst_4 = arith.constant 1.000000e+00 : f32
    %9 = vector.broadcast %cst_4 : f32 to vector<1x8xf32>
    %10 = arith.addf %9, %8 : vector<1x8xf32>
    %11 = arith.divf %9, %10 : vector<1x8xf32>
    %c0_5 = arith.constant 0 : index
    %c0_6 = arith.constant 0 : index
    %12 = vector.load %arg3[%c0_5, %c0_6] : memref<1x8xf32, #tpu.memory_space<vmem>>, vector<1x8xf32>
    tpu.vector_store %arg3[%c0_5, %c0_6], %11 {strides = array<i32>} : memref<1x8xf32, #tpu.memory_space<vmem>>, vector<1x8xf32>,
    return
  }
  func.func @transform_0(%arg0: i32) -> (i32, i32) {
    %c0_i32 = arith.constant 0 : i32
    %c0_i32_0 = arith.constant 0 : i32
    return %arg0, %c0_i32 : i32, i32
  }
  func.func @transform_1(%arg0: i32) -> (i32, i32) {
    %c0_i32 = arith.constant 0 : i32
    %c0_i32_0 = arith.constant 0 : i32
    %c0_i32_1 = arith.constant 0 : i32
    return %c0_i32, %c0_i32_0 : i32, i32
  }
  func.func @transform_2(%arg0: i32) -> (i32, i32) {
    %c0_i32 = arith.constant 0 : i32
    %c0_i32_0 = arith.constant 0 : i32
    return %c0_i32, %arg0 : i32, i32
  }
}

module attributes {stable_mosaic.version = 11 : i64} {
  func.func @_phase_b_kernel(%arg0: i32, %arg1: memref<8x200xbf16, #tpu.memory_space<vmem>>, %arg2: memref<2x200xf32, #tpu.memory_space<vmem>>, %arg3: memref<200x84xbf16, #tpu.memory_space<vmem>>, %arg4: memref<5x84xf32, #tpu.memory_space<vmem>>, %arg5: memref<8x84xbf16, #tpu.memory_space<vmem>>, %arg6: memref<2x84xf32, #tpu.memory_space<vmem>>, %arg7: memref<2x84xf32, #tpu.memory_space<vmem>>) attributes {dimension_semantics = [#tpu.dimension_semantics<arbitrary>], iteration_bounds = array<i64: 1>, scalar_prefetch = 0 : i64, scratch_operands = 1 : i64, tpu.core_type = #tpu.core_type<tc>, window_params = [{transform_indices = @transform_0, window_bounds = array<i64: 8, 200>}, {pipeline_mode = #tpu.pipeline_mode<synchronous>, transform_indices = @transform_1, window_bounds = array<i64: 2, 200>}, {pipeline_mode = #tpu.pipeline_mode<synchronous>, transform_indices = @transform_2, window_bounds = array<i64: 200, 84>}, {pipeline_mode = #tpu.pipeline_mode<synchronous>, transform_indices = @transform_3, window_bounds = array<i64: 5, 84>}, {transform_indices = @transform_4, window_bounds = array<i64: 8, 84>}, {pipeline_mode = #tpu.pipeline_mode<synchronous>, transform_indices = @transform_5, window_bounds = array<i64: 2, 84>}]} {
    %c0_i32 = arith.constant 0 : i32
    %0 = arith.cmpi eq, %arg0, %c0_i32 : i32
    %1 = arith.extui %0 : i1 to i32
    %c0_i32_0 = arith.constant 0 : i32
    %2 = arith.cmpi ne, %1, %c0_i32_0 : i32
    scf.if %2 {
      %cst_27 = arith.constant 0.000000e+00 : f32
      %38 = vector.broadcast %cst_27 : f32 to vector<2x84xf32>
      %c0_28 = arith.constant 0 : index
      %c0_29 = arith.constant 0 : index
      %39 = vector.load %arg7[%c0_28, %c0_29] : memref<2x84xf32, #tpu.memory_space<vmem>>, vector<2x84xf32>
      tpu.vector_store %arg7[%c0_28, %c0_29], %38 {strides = array<i32>} : memref<2x84xf32, #tpu.memory_space<vmem>>, vector<2x84xf32>,
    } else {
    }
    %c0 = arith.constant 0 : index
    %c0_1 = arith.constant 0 : index
    %3 = vector.load %arg4[%c0, %c0_1] : memref<5x84xf32, #tpu.memory_space<vmem>>, vector<1x84xf32>
    %c1 = arith.constant 1 : index
    %c0_2 = arith.constant 0 : index
    %4 = vector.load %arg4[%c1, %c0_2] : memref<5x84xf32, #tpu.memory_space<vmem>>, vector<1x84xf32>
    %c2 = arith.constant 2 : index
    %c0_3 = arith.constant 0 : index
    %5 = vector.load %arg4[%c2, %c0_3] : memref<5x84xf32, #tpu.memory_space<vmem>>, vector<1x84xf32>
    %c0_4 = arith.constant 0 : index
    %c0_5 = arith.constant 0 : index
    %6 = vector.load %arg1[%c0_4, %c0_5] : memref<8x200xbf16, #tpu.memory_space<vmem>>, vector<8x200xbf16>
    %7 = arith.extf %6 : vector<8x200xbf16> to vector<8x200xf32>
    %c0_6 = arith.constant 0 : index
    %c0_7 = arith.constant 0 : index
    %8 = vector.load %arg2[%c0_6, %c0_7] : memref<2x200xf32, #tpu.memory_space<vmem>>, vector<1x200xf32>
    %9 = vector.broadcast %8 : vector<1x200xf32> to vector<8x200xf32>
    %10 = arith.mulf %7, %9 : vector<8x200xf32>
    %c1_8 = arith.constant 1 : index
    %c0_9 = arith.constant 0 : index
    %11 = vector.load %arg2[%c1_8, %c0_9] : memref<2x200xf32, #tpu.memory_space<vmem>>, vector<1x200xf32>
    %12 = vector.broadcast %11 : vector<1x200xf32> to vector<8x200xf32>
    %13 = arith.addf %10, %12 : vector<8x200xf32>
    %14 = arith.truncf %13 : vector<8x200xf32> to vector<8x200xbf16>
    %c0_10 = arith.constant 0 : index
    %c0_11 = arith.constant 0 : index
    %15 = vector.load %arg3[%c0_10, %c0_11] : memref<200x84xbf16, #tpu.memory_space<vmem>>, vector<200x84xbf16>
    %cst = arith.constant dense<0.000000e+00> : vector<8x84xf32>
    %16 = tpu.matmul %14, %15, %cst {dimension_numbers = #tpu.dot_dimension_numbers<[1], [0], [0], [1], [0, 0, 1, 1], [], []>} : vector<8x200xbf16>, vector<200x84xbf16>, vector<8x84xf32> -> vector<8x84xf32>
    %17 = vector.broadcast %3 : vector<1x84xf32> to vector<8x84xf32>
    %18 = arith.addf %16, %17 : vector<8x84xf32>
    %cst_12 = arith.constant 0.000000e+00 : f32
    %19 = vector.broadcast %cst_12 : f32 to vector<8x84xf32>
    %20 = arith.maximumf %18, %19 : vector<8x84xf32>
    %21 = arith.truncf %20 : vector<8x84xf32> to vector<8x84xbf16>
    %c0_13 = arith.constant 0 : index
    %c0_14 = arith.constant 0 : index
    %22 = vector.load %arg5[%c0_13, %c0_14] : memref<8x84xbf16, #tpu.memory_space<vmem>>, vector<8x84xbf16>
    tpu.vector_store %arg5[%c0_13, %c0_14], %21 {strides = array<i32>} : memref<8x84xbf16, #tpu.memory_space<vmem>>, vector<8x84xbf16>,
    %23 = arith.extf %21 : vector<8x84xbf16> to vector<8x84xf32>
    %c0_15 = arith.constant 0 : index
    %c0_16 = arith.constant 0 : index
    %24 = vector.load %arg7[%c0_15, %c0_16] : memref<2x84xf32, #tpu.memory_space<vmem>>, vector<1x84xf32>
    %cst_17 = arith.constant dense<0.000000e+00> : vector<84xf32>
    %25 = vector.multi_reduction <add>, %23, %cst_17 [0] : vector<8x84xf32> to vector<84xf32>
    %26 = vector.shape_cast %25 : vector<84xf32> to vector<1x84xf32>
    %27 = arith.addf %24, %26 : vector<1x84xf32>
    %c0_18 = arith.constant 0 : index
    %c0_19 = arith.constant 0 : index
    %28 = vector.load %arg7[%c0_18, %c0_19] : memref<2x84xf32, #tpu.memory_space<vmem>>, vector<1x84xf32>
    tpu.vector_store %arg7[%c0_18, %c0_19], %27 {strides = array<i32>} : memref<2x84xf32, #tpu.memory_space<vmem>>, vector<1x84xf32>,
    %c1_20 = arith.constant 1 : index
    %c0_21 = arith.constant 0 : index
    %29 = vector.load %arg7[%c1_20, %c0_21] : memref<2x84xf32, #tpu.memory_space<vmem>>, vector<1x84xf32>
    %30 = arith.mulf %23, %23 : vector<8x84xf32>
    %cst_22 = arith.constant dense<0.000000e+00> : vector<84xf32>
    %31 = vector.multi_reduction <add>, %30, %cst_22 [0] : vector<8x84xf32> to vector<84xf32>
    %32 = vector.shape_cast %31 : vector<84xf32> to vector<1x84xf32>
    %33 = arith.addf %29, %32 : vector<1x84xf32>
    %c1_23 = arith.constant 1 : index
    %c0_24 = arith.constant 0 : index
    %34 = vector.load %arg7[%c1_23, %c0_24] : memref<2x84xf32, #tpu.memory_space<vmem>>, vector<1x84xf32>
    tpu.vector_store %arg7[%c1_23, %c0_24], %33 {strides = array<i32>} : memref<2x84xf32, #tpu.memory_space<vmem>>, vector<1x84xf32>,
    %c0_i32_25 = arith.constant 0 : i32
    %35 = arith.cmpi eq, %arg0, %c0_i32_25 : i32
    %36 = arith.extui %35 : i1 to i32
    %c0_i32_26 = arith.constant 0 : i32
    %37 = arith.cmpi ne, %36, %c0_i32_26 : i32
    scf.if %37 {
      %c0_27 = arith.constant 0 : index
      %c0_28 = arith.constant 0 : index
      %38 = vector.load %arg7[%c0_27, %c0_28] : memref<2x84xf32, #tpu.memory_space<vmem>>, vector<1x84xf32>
      %cst_29 = arith.constant 1.250000e-01 : f32
      %39 = vector.broadcast %cst_29 : f32 to vector<1x84xf32>
      %40 = arith.mulf %38, %39 : vector<1x84xf32>
      %c1_30 = arith.constant 1 : index
      %c0_31 = arith.constant 0 : index
      %41 = vector.load %arg7[%c1_30, %c0_31] : memref<2x84xf32, #tpu.memory_space<vmem>>, vector<1x84xf32>
      %cst_32 = arith.constant 1.250000e-01 : f32
      %42 = vector.broadcast %cst_32 : f32 to vector<1x84xf32>
      %43 = arith.mulf %41, %42 : vector<1x84xf32>
      %44 = arith.mulf %40, %40 : vector<1x84xf32>
      %45 = arith.subf %43, %44 : vector<1x84xf32>
      %cst_33 = arith.constant 9.99999974E-6 : f32
      %46 = vector.broadcast %cst_33 : f32 to vector<1x84xf32>
      %47 = arith.addf %45, %46 : vector<1x84xf32>
      %48 = math.rsqrt %47 : vector<1x84xf32>
      %49 = arith.mulf %4, %48 : vector<1x84xf32>
      %50 = arith.mulf %40, %49 : vector<1x84xf32>
      %51 = arith.subf %5, %50 : vector<1x84xf32>
      %c3 = arith.constant 3 : index
      %c0_34 = arith.constant 0 : index
      %52 = vector.load %arg4[%c3, %c0_34] : memref<5x84xf32, #tpu.memory_space<vmem>>, vector<1x84xf32>
      %c4 = arith.constant 4 : index
      %c0_35 = arith.constant 0 : index
      %53 = vector.load %arg4[%c4, %c0_35] : memref<5x84xf32, #tpu.memory_space<vmem>>, vector<1x1xf32>
      %54 = arith.mulf %52, %49 : vector<1x84xf32>
      %c0_36 = arith.constant 0 : index
      %c0_37 = arith.constant 0 : index
      %55 = vector.load %arg6[%c0_36, %c0_37] : memref<2x84xf32, #tpu.memory_space<vmem>>, vector<1x84xf32>
      tpu.vector_store %arg6[%c0_36, %c0_37], %54 {strides = array<i32>} : memref<2x84xf32, #tpu.memory_space<vmem>>, vector<1x84xf32>,
      %56 = arith.mulf %52, %51 : vector<1x84xf32>
      %cst_38 = arith.constant dense<0.000000e+00> : vector<1xf32>
      %57 = vector.multi_reduction <add>, %56, %cst_38 [1] : vector<1x84xf32> to vector<1xf32>
      %58 = vector.shape_cast %57 : vector<1xf32> to vector<1x1xf32>
      %59 = arith.addf %58, %53 : vector<1x1xf32>
      %60 = vector.shape_cast %59 : vector<1x1xf32> to vector<1x1xf32>
      %61 = vector.broadcast %60 : vector<1x1xf32> to vector<1x84xf32>
      %c1_39 = arith.constant 1 : index
      %c0_40 = arith.constant 0 : index
      %62 = vector.load %arg6[%c1_39, %c0_40] : memref<2x84xf32, #tpu.memory_space<vmem>>, vector<1x84xf32>
      tpu.vector_store %arg6[%c1_39, %c0_40], %61 {strides = array<i32>} : memref<2x84xf32, #tpu.memory_space<vmem>>, vector<1x84xf32>,
    } else {
    }
    return
  }
  func.func @transform_0(%arg0: i32) -> (i32, i32) {
    %c0_i32 = arith.constant 0 : i32
    %c0_i32_0 = arith.constant 0 : i32
    return %arg0, %c0_i32 : i32, i32
  }
  func.func @transform_1(%arg0: i32) -> (i32, i32) {
    %c0_i32 = arith.constant 0 : i32
    %c0_i32_0 = arith.constant 0 : i32
    %c0_i32_1 = arith.constant 0 : i32
    return %c0_i32, %c0_i32_0 : i32, i32
  }
  func.func @transform_2(%arg0: i32) -> (i32, i32) {
    %c0_i32 = arith.constant 0 : i32
    %c0_i32_0 = arith.constant 0 : i32
    %c0_i32_1 = arith.constant 0 : i32
    return %c0_i32, %c0_i32_0 : i32, i32
  }
  func.func @transform_3(%arg0: i32) -> (i32, i32) {
    %c0_i32 = arith.constant 0 : i32
    %c0_i32_0 = arith.constant 0 : i32
    %c0_i32_1 = arith.constant 0 : i32
    return %c0_i32, %c0_i32_0 : i32, i32
  }
  func.func @transform_4(%arg0: i32) -> (i32, i32) {
    %c0_i32 = arith.constant 0 : i32
    %c0_i32_0 = arith.constant 0 : i32
    return %arg0, %c0_i32 : i32, i32
  }
  func.func @transform_5(%arg0: i32) -> (i32, i32) {
    %c0_i32 = arith.constant 0 : i32
    %c0_i32_0 = arith.constant 0 : i32
    %c0_i32_1 = arith.constant 0 : i32
    return %c0_i32, %c0_i32_0 : i32, i32
  }
}

</mosaic_0001>

<bundles_post_ra>
// kernel: mlpnet_forward.5
= control target key start
LH: loop header
LB: loop body
LE: loop exit
PB: predicated region body
PF: predicated region fallthrough
CT: control target
= control target key end

     0   :  { %vm21_vm0 = vcmask 687104   ;;  %v163_v1 = vmov 0.0   ;;  %vm164_vm1 = vmmov 0   ;;  %s203_s0 = inlined_call_operand.vmem [shape: bf16[8,84], index: 0, kind: input, shape index: {}]   ;;  %s204_s1 = inlined_call_operand.vmem [shape: f32[2,84], index: 1, kind: input, shape index: {}]   ;;  %s205_s2 = inlined_call_operand.hbm [shape: f32[1,8], index: 2, kind: output, shape index: {}]  }
   0x1   :  { %v12_v0 = vld [vmem:[%s203_s0] sm:$0xf]  ;;  %125 = vmatprep.subr.mxu0 %v163_v1  ;;  %127 = vmatprep.mubr.msk.f32.mxu0 %vm164_vm1, %v163_v1 }
   0x2   :  { %v13_v2 = vunpack.c.l.bf16 %v12_v0  ;;  %v15_v3 = vld [vmem:[%s204_s1 + $0x1] sm:$0x1] }
   0x3   :  { %7 = vsyncpa [#allocation3], 0  ;;  %v165_v4 = vmov 0   ;;  %v14_v5 = vld [vmem:[%s204_s1] sm:$0x1]  ;;  %s166_s0 = smov [#allocation2]  }
   0x4   :  { %134 = vset.pattern.permute.xlu0 %v165_v4  ;;  %126 = vmatpush3.xpose.msk.msra.mxu0 %vm21_vm0, %v13_v2  ;;  %s112_s15 = sshll.u32 %s166_s0, 4  ;;  %vm104_vm2 = vcmask 57344   ;;  %s113_s15 = int_to_ptr.vmem [resolvable:$true] %s112_s15 }
   0x5   :  { %18 = vperm.xlu0 %134, %v15_v3   ;;  %s139_s16 = scalar_lea.vmem %s113_s15, 16  ;;  %s143_s1 = scalar_lea.vmem %s113_s15, 32 }
   0x6   :  { %p140_p0 = scmp.ne.s32.totalorder %s113_s15, %s139_s16  ;;  %p144_p1 = scmp.lt.s32.totalorder %s113_s15, %s113_s15 }
   0x7   :  { %128 = vmatmul.mubr.msk.f32.vlgmr.msra.gmra.mrb[0].mxu0 %vm21_vm0, %v14_v5  ;;  %p145_p2 = scmp.lt.s32.totalorder %s143_s1, %s139_s16 }
   0x9   :  { %p146_p3 = por %p145_p2, %p144_p1 }
   0xb   :  { %p147_p4 = pnand %p146_p3, %p140_p0 }
  0x84   :  { %v19_v6 = vpop.permute.xlu0 %18 }
  0xda   :  { %v94_v7 = vpop.f32.mrb[0].mxu0 }
  0xdb   :  { %v95_v8 = vadd.f32 %v94_v7, %v19_v6  ;;  %v129_v9 = vpop.f32.mrb[1].mxu0 }
  0xdd   :  { %v122_v10 = vmul.f32 -1.442695, %v95_v8 }
  0xdf   :  { %135 = vpow2.f32 %v122_v10 }
  0xe9   :  { %v136_v11 = vpop.eup %135 }
  0xea   :  { %v101_v12 = vadd.f32 1.0, %v136_v11 }
  0xec   :  { %137 = vrcp.f32 %v101_v12 }
  0xf6   :  { %v138_v13 = vpop.eup %137 }
  0xf7   :  { %105 = vst.msk [vmem:[#allocation2] sm:$0x1] %vm104_vm2, %v138_v13 }
  0xf8   :  { %150 = shalt.err (!%p147_p4)
}
  0xf9   :  { %s151_s19 = scalar_lea.hbm %s205_s2, 16 }
  0xfa   :  { %p152_p5 = scmp.ne.s32.totalorder %s205_s2, %s151_s19  ;;  %p155_p6 = scmp.lt.u32.totalorder %s151_s19, %s205_s2 }
  0xfc   :  { %p157_p7 = pnand %p155_p6, %p152_p5 }
  0xfe   :  { %160 = shalt.err (!%p157_p7)
}
  0xff   :  { %115 = dma.vmem_to_hbm [thread:$0]  %s113_s15, 16, %s205_s2, [#allocation3]  }
 0x100   :  { %161 = dma.done.wait [#allocation3], 16  }
 0x101   :  { %162 = vsyncadd [#allocation3], 4294967280 }
 0x102   :  { %119 = vsyncpa [#allocation3], 1 }

// kernel: mlpnet_forward.3
= control target key start
LH: loop header
LB: loop body
LE: loop exit
PB: predicated region body
PF: predicated region fallthrough
CT: control target
= control target key end

     0   :  { %vm343_vm0 = vcmask 64512   ;;  %vm347_vm1 = vcmask 1043456   ;;  %vm21_vm2 = vcmask 1041408   ;;  %vm22_vm3 = vcmask 584706   ;;  %s912_s1 = inlined_call_operand.vmem [shape: bf16[392,200], index: 1, kind: input, shape index: {}]   ;;  %s913_s0 = inlined_call_operand.vmem [shape: f32[8,392], index: 0, kind: input, shape index: {}]   ;;  %s914_s2 = inlined_call_operand.vmem [shape: f32[3,200], index: 2, kind: input, shape index: {}]   ;;  %s915_s3 = inlined_call_operand.vmem [shape: bf16[8,200], index: 3, kind: output, shape index: {0}]   ;;  %s916_s4 = inlined_call_operand.vmem [shape: f32[2,200], index: 4, kind: output, shape index: {1}]  }
   0x1   :  { %v615_v0 = vld [vmem:[%s912_s1 + $0x4] ss:$8 sps:$4 sm:$0xff]   ;;  %v617_v1 = vld [vmem:[%s912_s1] ss:$8 sps:$4 sm:$0xff]   ;;  %v618_v2 = vld [vmem:[%s912_s1 + $0x14] ss:$8 sps:$4 sm:$0xff]  }
   0x2   :  { %354 = vmatprep.subr.bf16.mxu1 %v615_v0  ;;  %v620_v3 = vld [vmem:[%s912_s1 + $0x10] ss:$8 sps:$4 sm:$0xff]   ;;  %v621_v4 = vld [vmem:[%s912_s1 + $0x24] ss:$8 sps:$4 sm:$0xff]   ;;  %v623_v5 = vld [vmem:[%s912_s1 + $0x20] ss:$8 sps:$4 sm:$0xff]   ;;  %v88_v0 = vlaneseq }
   0x3   :  { %355 = vmatpush1.bf16.msra.mxu1 %v617_v1  ;;  %v624_v6 = vld [vmem:[%s912_s1 + $0x34] ss:$8 sps:$4 sm:$0xff]   ;;  %v636_v7 = vld [vmem:[%s912_s1 + $0x104] ss:$8 sps:$4 sm:$0xff]   ;;  %v626_v8 = vld [vmem:[%s912_s1 + $0x30] ss:$8 sps:$4 sm:$0xff]  }
   0x4   :  { %356 = vmatprep.subr.bf16.mxu1 %v618_v2  ;;  %v627_v9 = vld [vmem:[%s912_s1 + $0x44] ss:$8 sps:$4 sm:$0xff]   ;;  %v640_v10 = vld [vmem:[%s912_s1 + $0x100] ss:$8 sps:$4 sm:$0xff]   ;;  %395 = vmatprep.subr.bf16.mxu0 %v636_v7  ;;  %v642_v11 = vld [vmem:[%s912_s1 + $0x114] ss:$8 sps:$4 sm:$0xff]  }
   0x5   :  { %396 = vmatpush1.bf16.msra.mxu0 %v640_v10  ;;  %v629_v12 = vld [vmem:[%s912_s1 + $0x40] ss:$8 sps:$4 sm:$0xff]   ;;  %v646_v13 = vld [vmem:[%s912_s1 + $0x110] ss:$8 sps:$4 sm:$0xff]   ;;  %v648_v14 = vld [vmem:[%s912_s1 + $0x124] ss:$8 sps:$4 sm:$0xff]  }
   0x6   :  { %397 = vmatprep.subr.bf16.mxu0 %v642_v11  ;;  %v630_v15 = vld [vmem:[%s912_s1 + $0x54] ss:$8 sps:$4 sm:$0xff]   ;;  %v652_v16 = vld [vmem:[%s912_s1 + $0x120] ss:$8 sps:$4 sm:$0xff]   ;;  %v632_v18 = vld [vmem:[%s912_s1 + $0x50] ss:$8 sps:$4 sm:$0xff]  }
   0x7   :  { %357 = vmatpush1.bf16.msra.mxu1 %v620_v3  ;;  %v654_v17 = vld [vmem:[%s912_s1 + $0x134] ss:$8 sps:$4 sm:$0xff]   ;;  %v633_v19 = vld [vmem:[%s912_s1 + $0x64] ss:$8 sps:$4 sm:$0xff]   ;;  %v658_v20 = vld [vmem:[%s912_s1 + $0x130] ss:$8 sps:$4 sm:$0xff]  }
   0x8   :  { %358 = vmatprep.subr.bf16.mxu1 %v621_v4  ;;  %v660_v21 = vld [vmem:[%s912_s1 + $0x144] ss:$8 sps:$4 sm:$0xff]   ;;  %v635_v22 = vld [vmem:[%s912_s1 + $0x60] ss:$8 sps:$4 sm:$0xff]   ;;  %v638_v23 = vld [vmem:[%s912_s1 + $0x74] ss:$8 sps:$4 sm:$0xff]  }
   0x9   :  { %398 = vmatpush1.bf16.msra.mxu0 %v646_v13  ;;  %v664_v24 = vld [vmem:[%s912_s1 + $0x140] ss:$8 sps:$4 sm:$0xff]   ;;  %v666_v25 = vld [vmem:[%s912_s1 + $0x154] ss:$8 sps:$4 sm:$0xff]   ;;  %v641_v26 = vld [vmem:[%s912_s1 + $0x70] ss:$8 sps:$4 sm:$0xff]  }
   0xa   :  { %399 = vmatprep.subr.bf16.mxu0 %v648_v14  ;;  %v644_v27 = vld [vmem:[%s912_s1 + $0x84] ss:$8 sps:$4 sm:$0xff]   ;;  %v670_v28 = vld [vmem:[%s912_s1 + $0x150] ss:$8 sps:$4 sm:$0xff]   ;;  %v647_v30 = vld [vmem:[%s912_s1 + $0x80] ss:$8 sps:$4 sm:$0xff]  }
   0xb   :  { %359 = vmatpush1.bf16.msra.mxu1 %v623_v5  ;;  %v672_v29 = vld [vmem:[%s912_s1 + $0x164] ss:$8 sps:$4 sm:$0xff]   ;;  %v650_v31 = vld [vmem:[%s912_s1 + $0x94] ss:$8 sps:$4 sm:$0xff]   ;;  %v676_v33 = vld [vmem:[%s912_s1 + $0x160] ss:$8 sps:$4 sm:$0xff]  }
   0xc   :  { %360 = vmatprep.subr.bf16.mxu1 %v624_v6  ;;  %v33_v32 = vld [vmem:[%s913_s0 + $0x18] sm:$0xff]  ;;  %v31_v35 = vld [vmem:[%s913_s0 + $0x8] sm:$0xff]  ;;  %v86_v39 = vld [vmem:[%s912_s1 + $0x180] sm:$0xff]  ;;  %v691_v60 = vmov 0.0   ;;  %v89_v2 = vshrl.u32 %v88_v0, 7  ;;  %vm446_vm5 = vcmask 588804  }
   0xd   :  { %400 = vmatpush1.bf16.msra.mxu0 %v652_v16  ;;  %v37_v34 = vpack.c.bf16 %v33_v32, %v33_v32  ;;  %v678_v36 = vld [vmem:[%s912_s1 + $0x174] ss:$8 sps:$4 sm:$0xff]   ;;  %v35_v37 = vpack.c.bf16 %v31_v35, %v31_v35  ;;  %v653_v38 = vld [vmem:[%s912_s1 + $0x90] ss:$8 sps:$4 sm:$0xff]   ;;  %v656_v40 = vld [vmem:[%s912_s1 + $0xa4] ss:$8 sps:$4 sm:$0xff]   ;;  %v603_v42 = vcombine.high %v86_v39, %v86_v39  ;;  %v602_v43 = vcombine.low %v86_v39, %v86_v39 }
   0xe   :  { %401 = vmatprep.subr.bf16.mxu0 %v654_v17  ;;  %v682_v41 = vld [vmem:[%s912_s1 + $0x170] ss:$8 sps:$4 sm:$0xff]   ;;  %v659_v44 = vld [vmem:[%s912_s1 + $0xa0] ss:$8 sps:$4 sm:$0xff]   ;;  %v662_v45 = vld [vmem:[%s912_s1 + $0xb4] ss:$8 sps:$4 sm:$0xff]  }
   0xf   :  { %361 = vmatpush1.bf16.msra.mxu1 %v626_v8  ;;  %605 = vmatprep.mubr.msk.bf16.mxu0 %vm343_vm0, %v37_v34  ;;  %v32_v46 = vld [vmem:[%s913_s0 + $0x10] sm:$0xff]  ;;  %v349_v47 = vsel %vm347_vm1, %v602_v43, 0  ;;  %v668_v49 = vld [vmem:[%s912_s1 + $0xc4] ss:$8 sps:$4 sm:$0xff]   ;;  %v671_v51 = vld [vmem:[%s912_s1 + $0xc0] ss:$8 sps:$4 sm:$0xff]  }
  0x10   :  { %362 = vmatprep.subr.bf16.mxu1 %v627_v9  ;;  %386 = vmatprep.mubr.bf16.mxu1 %v35_v37  ;;  %v665_v48 = vld [vmem:[%s912_s1 + $0xb0] ss:$8 sps:$4 sm:$0xff]   ;;  %v36_v50 = vpack.c.bf16 %v32_v46, %v32_v46  ;;  %v674_v52 = vld [vmem:[%s912_s1 + $0xd4] ss:$8 sps:$4 sm:$0xff]   ;;  %v680_v54 = vld [vmem:[%s912_s1 + $0xe4] ss:$8 sps:$4 sm:$0xff]  }
  0x11   :  { %402 = vmatpush1.bf16.msra.mxu0 %v658_v20  ;;  %v677_v53 = vld [vmem:[%s912_s1 + $0xd0] ss:$8 sps:$4 sm:$0xff]   ;;  %v683_v55 = vld [vmem:[%s912_s1 + $0xe0] ss:$8 sps:$4 sm:$0xff]   ;;  %v685_v56 = vld [vmem:[%s912_s1 + $0xf4] ss:$8 sps:$4 sm:$0xff]  }
  0x12   :  { %403 = vmatprep.subr.bf16.mxu0 %v660_v21  ;;  %v688_v57 = vld [vmem:[%s912_s1 + $0xf0] ss:$8 sps:$4 sm:$0xff]   ;;  %v30_v58 = vld [vmem:[%s913_s0] sm:$0xff]  ;;  %vm23_vm4 = vmor %vm22_vm3, %vm21_vm2  ;;  %v90_v3 = vsub.s32 0, %v89_v2  ;;  %v94_v5 = vsub.s32 1, %v89_v2  ;;  %vm458_vm7 = vcmask 588800  }
  0x13   :  { %363 = vmatpush1.bf16.msra.mxu1 %v629_v12  ;;  %v34_v59 = vpack.c.bf16 %v30_v58, %v30_v58  ;;  %24 = vst.msk [vmem:[#allocation2] sm:$0xf] %vm23_vm4, %v691_v60  ;;  %v25_v4 = vld [vmem:[%s914_s2] ss:$4 sm:$0x3]  ;;  %vm447_vm6 = vmor %vm446_vm5, %vm347_vm1  ;;  %vm888_vm8 = vcmp.lt.s32.totalorder %v88_v0, 200 }
  0x14   :  { %364 = vmatprep.subr.bf16.mxu1 %v630_v15  ;;  %v91_v6 = vrot.slane %v25_v4, %v90_v3  ;;  %v95_v7 = vrot.slane %v25_v4, %v94_v5 }
  0x15   :  { %404 = vmatpush1.bf16.msra.mxu0 %v664_v24 }
  0x16   :  { %405 = vmatprep.subr.bf16.mxu0 %v666_v25 }
  0x17   :  { %365 = vmatpush1.bf16.msra.mxu1 %v632_v18 }
  0x18   :  { %366 = vmatprep.subr.bf16.mxu1 %v633_v19 }
  0x19   :  { %406 = vmatpush1.bf16.msra.mxu0 %v670_v28 }
  0x1a   :  { %407 = vmatprep.subr.bf16.mxu0 %v672_v29  ;;  %v451_v58 = vld [vmem:[#allocation2] ss:$2 sm:$0x3] }
  0x1b   :  { %367 = vmatpush1.bf16.msra.mxu1 %v635_v22 }
  0x1c   :  { %368 = vmatprep.subr.bf16.mxu1 %v638_v23 }
  0x1d   :  { %408 = vmatpush1.bf16.msra.mxu0 %v676_v33 }
  0x1e   :  { %409 = vmatprep.subr.bf16.mxu0 %v678_v36 }
  0x1f   :  { %369 = vmatpush1.bf16.msra.mxu1 %v641_v26 }
  0x20   :  { %370 = vmatprep.subr.bf16.mxu1 %v644_v27 }
  0x21   :  { %410 = vmatpush1.bf16.msra.mxu0 %v682_v41 }
  0x22   :  { %604 = vmatprep.subr.msk.bf16.mxu0 %vm347_vm1, %v603_v42 }
  0x23   :  { %371 = vmatpush1.bf16.msra.mxu1 %v647_v30  ;;  %v692_v30 = vmov 1966171168  }
  0x24   :  { %372 = vmatprep.subr.bf16.mxu1 %v650_v31  ;;  %v470_v31 = vunpack.c.l.s4 %v692_v30 }
  0x25   :  { %412 = vmatpush1.bf16.msra.mxu0 %v349_v47 }
  0x26   :  { %v471_v41 = vunpack.c.0.s8 %v470_v31 }
  0x27   :  { %373 = vmatpush1.bf16.msra.mxu1 %v653_v38 }
  0x28   :  { %374 = vmatprep.subr.bf16.mxu1 %v656_v40  ;;  %428 = vmatmul.mubr.bf16.vlgmr.msra.gmra.mrb[0].mxu0 %v36_v50  ;;  %v474_v50 = vsub.s32 %v471_v41, %v89_v2 }
  0x2b   :  { %375 = vmatpush1.bf16.msra.mxu1 %v659_v44 }
  0x2c   :  { %376 = vmatprep.subr.bf16.mxu1 %v662_v45 }
  0x2f   :  { %377 = vmatpush1.bf16.msra.mxu1 %v665_v48 }
  0x30   :  { %378 = vmatprep.subr.bf16.mxu1 %v668_v49 }
  0x33   :  { %379 = vmatpush1.bf16.msra.mxu1 %v671_v51 }
  0x34   :  { %380 = vmatprep.subr.bf16.mxu1 %v674_v52 }
  0x37   :  { %381 = vmatpush1.bf16.msra.mxu1 %v677_v53 }
  0x38   :  { %382 = vmatprep.subr.bf16.mxu1 %v680_v54 }
  0x3b   :  { %383 = vmatpush1.bf16.msra.mxu1 %v683_v55 }
  0x3c   :  { %384 = vmatprep.subr.bf16.mxu1 %v685_v56 }
  0x3f   :  { %385 = vmatpush1.bf16.msra.mxu1 %v688_v57 }
  0x42   :  { %387 = vmatmul.mubr.bf16.vlgmr.msra.gmra.mrb[0].mxu1 %v34_v59 }
  0xfb   :  { %v429_v61 = vpop.f32.mrb[0].mxu0 }
  0xfc   :  { %v431_v62 = vpop.f32.mrb[1].mxu0 }
  0xfd   :  { %v433_v63 = vpop.f32.mrb[2].mxu0 }
  0xfe   :  { %v434_v1 = vpop.f32.mrb[3].mxu0 }
 0x115   :  { %v388_v8 = vpop.f32.mrb[0].mxu1 }
 0x116   :  { %v389_v9 = vadd.f32 %v388_v8, %v91_v6  ;;  %v390_v10 = vpop.f32.mrb[1].mxu1 }
 0x117   :  { %v391_v11 = vadd.f32 %v390_v10, %v95_v7  ;;  %v392_v12 = vpop.f32.mrb[2].mxu1 }
 0x118   :  { %v430_v13 = vadd.f32 %v429_v61, %v389_v9  ;;  %v393_v14 = vpop.f32.mrb[3].mxu1  ;;  %v552_v9 = vld [vmem:[%s914_s2 + $0x1] ss:$4 sm:$0x3] }
 0x119   :  { %v432_v15 = vadd.f32 %v431_v62, %v391_v11  ;;  %v491_v62 = vld [vmem:[#allocation2 + $0x1] ss:$2 sm:$0x3]  ;;  %v553_v12 = vld [vmem:[%s914_s2 + $0x2] ss:$4 sm:$0x3] }
 0x11a   :  { %v436_v16 = vmax.f32 %v430_v13, 0.0 }
 0x11b   :  { %v437_v17 = vmax.f32 %v432_v15, 0.0 }
 0x11c   :  { %v438_v18 = vpack.c.bf16 %v436_v16, %v436_v16 }
 0x11d   :  { %v439_v19 = vpack.c.bf16 %v437_v17, %v437_v17  ;;  %v608_v20 = vpack.c.bf16 %v437_v17, %v436_v16 }
 0x11e   :  { %v449_v21 = vunpack.c.l.bf16 %v438_v18 }
 0x11f   :  { %448 = vst.msk [vmem:[%s915_s3] sm:$0xff] %vm447_vm6, %v608_v20  ;;  %v450_v22 = vunpack.c.l.bf16 %v439_v19 }
 0x120   :  { %v452_v23 = vrot.slane %v449_v21, 4  ;;  %v492_v24 = vmul.f32 %v449_v21, %v449_v21 }
 0x121   :  { %v459_v25 = vsel %vm458_vm7, %v450_v22, 0.0  ;;  %v493_v26 = vmul.f32 %v450_v22, %v450_v22 }
 0x122   :  { %v453_v27 = vadd.f32 %v452_v23, %v449_v21  ;;  %v494_v28 = vrot.slane %v492_v24, 4  ;;  %v460_v29 = vrot.slane %v459_v25, 4 }
 0x123   :  { %v500_v32 = vsel %vm458_vm7, %v493_v26, 0.0 }
 0x124   :  { %v454_v33 = vrot.slane %v453_v27, 2  ;;  %v495_v34 = vadd.f32 %v494_v28, %v492_v24  ;;  %v461_v35 = vadd.f32 %v460_v29, %v459_v25  ;;  %v501_v36 = vrot.slane %v500_v32, 4 }
 0x126   :  { %v455_v37 = vadd.f32 %v454_v33, %v453_v27  ;;  %v496_v38 = vrot.slane %v495_v34, 2  ;;  %v462_v39 = vrot.slane %v461_v35, 2  ;;  %v502_v40 = vadd.f32 %v501_v36, %v500_v32 }
 0x128   :  { %v456_v42 = vrot.slane %v455_v37, 1  ;;  %v497_v43 = vadd.f32 %v496_v38, %v495_v34  ;;  %v463_v44 = vadd.f32 %v462_v39, %v461_v35  ;;  %v503_v45 = vrot.slane %v502_v40, 2 }
 0x12a   :  { %v498_v46 = vrot.slane %v497_v43, 1  ;;  %v464_v47 = vrot.slane %v463_v44, 1  ;;  %v504_v48 = vadd.f32 %v503_v45, %v502_v40  ;;  %v457_v49 = vadd.f32 %v456_v42, %v455_v37 }
 0x12c   :  { %v465_v51 = vadd.f32 %v464_v47, %v463_v44  ;;  %v505_v52 = vrot.slane %v504_v48, 1  ;;  %v499_v53 = vadd.f32 %v498_v46, %v497_v43 }
 0x12e   :  { %v468_v54 = vcombine.low %v457_v49, %v465_v51  ;;  %v506_v55 = vadd.f32 %v505_v52, %v504_v48 }
 0x130   :  { %v475_v56 = vrot.slane %v468_v54, %v474_v50  ;;  %v509_v57 = vcombine.low %v499_v53, %v506_v55 }
 0x132   :  { %v482_v59 = vrot.slane %v475_v56, %v474_v50  ;;  %v516_v60 = vrot.slane %v509_v57, %v474_v50 }
 0x134   :  { %v484_v63 = vadd.f32 %v482_v59, %v451_v58  ;;  %v523_v1 = vrot.slane %v516_v60, %v474_v50 }
 0x136   :  { %489 = vst.msk [vmem:[#allocation2] ss:$2 sm:$0x3] %vm888_vm8, %v484_v63  ;;  %v525_v2 = vadd.f32 %v523_v1, %v491_v62 }
 0x138   :  { %526 = vst.msk [vmem:[#allocation2 + $0x1] ss:$2 sm:$0x3] %vm888_vm8, %v525_v2 }
 0x13d   :  { %v530_v3 = vld [vmem:[#allocation2] ss:$2 sm:$0x3] }
 0x13e   :  { %v531_v4 = vmul.f32 0.125, %v530_v3 }
 0x13f   :  { %v532_v5 = vld [vmem:[#allocation2 + $0x1] ss:$2 sm:$0x3] }
 0x140   :  { %v533_v6 = vmul.f32 0.125, %v532_v5  ;;  %v534_v7 = vmul.f32 %v531_v4, %v531_v4 }
 0x142   :  { %v535_v8 = vsub.f32 %v533_v6, %v534_v7 }
 0x144   :  { %v536_v0 = vadd.f32 1e-05, %v535_v8 }
 0x146   :  { %689 = vrsqrt.f32 %v536_v0 }
 0x150   :  { %v690_v10 = vpop.eup %689 }
 0x151   :  { %v538_v11 = vmul.f32 %v690_v10, %v552_v9 }
 0x153   :  { %539 = vst.msk [vmem:[%s916_s4] ss:$2 sm:$0x3] %vm888_vm8, %v538_v11  ;;  %v540_v13 = vmul.f32 %v538_v11, %v531_v4 }
 0x155   :  { %v541_v14 = vsub.f32 %v553_v12, %v540_v13 }
 0x157   :  { %607 = vst.msk [vmem:[%s916_s4 + $0x1] ss:$2 sm:$0x3] %vm888_vm8, %v541_v14 }

// kernel: mlpnet_forward.4
= control target key start
LH: loop header
LB: loop body
LE: loop exit
PB: predicated region body
PF: predicated region fallthrough
CT: control target
= control target key end

     0   :  { %v314_v0 = vmov 0   ;;  %vm24_vm0 = vcmask 680960   ;;  %v34_v3 = vlaneseq  ;;  %v315_v4 = vmov 0.0   ;;  %s437_s2 = inlined_call_operand.vmem [shape: bf16[200,84], index: 2, kind: input, shape index: {}]   ;;  %s438_s0 = inlined_call_operand.vmem [shape: bf16[8,200], index: 0, kind: input, shape index: {}]   ;;  %s439_s1 = inlined_call_operand.vmem [shape: f32[2,200], index: 1, kind: input, shape index: {}]   ;;  %s440_s3 = inlined_call_operand.vmem [shape: f32[5,84], index: 3, kind: input, shape index: {}]   ;;  %s441_s4 = inlined_call_operand.vmem [shape: bf16[8,84], index: 4, kind: output, shape index: {0}]   ;;  %s442_s5 = inlined_call_operand.vmem [shape: f32[2,84], index: 5, kind: output, shape index: {1}]  }
   0x1   :  { %175 = vmatprep.subr.bf16.mxu0 %v314_v0  ;;  %v299_v1 = vld [vmem:[%s437_s2] sm:$0xff]   ;;  %298 = vset.pattern.permute.xlu0 %v314_v0  ;;  %v300_v2 = vld [vmem:[%s437_s2 + $0x8] sm:$0xff]   ;;  %25 = vst.msk [vmem:[#allocation2] sm:$0x3] %vm24_vm0, %v315_v4  ;;  %v301_v5 = vld [vmem:[%s437_s2 + $0x10] sm:$0xff]   ;;  %vm167_vm1 = vcmask 588800  }
   0x2   :  { %176 = vmatpush1.bf16.msra.mxu0 %v299_v1  ;;  %v35_v6 = vshrl.u32 %v34_v3, 7  ;;  %v302_v7 = vld [vmem:[%s437_s2 + $0x18] sm:$0xff]   ;;  %v29_v9 = vld [vmem:[%s438_s0] sm:$0xff]  ;;  %v304_v17 = vld [vmem:[%s437_s2 + $0x28] sm:$0xff]   ;;  %vm171_vm2 = vcmask 1043456   ;;  %vm217_vm3 = vcmask 683008  }
   0x3   :  { %177 = vmatprep.subr.bf16.mxu0 %v314_v0  ;;  %v31_v10 = vunpack.c.h.bf16 %v29_v9  ;;  %v32_v11 = vld [vmem:[%s439_s1] ss:$2 sm:$0x3]  ;;  %v280_v12 = vld [vmem:[%s439_s1 + $0x1] ss:$2 sm:$0x3]  ;;  %v30_v25 = vunpack.c.l.bf16 %v29_v9 }
   0x4   :  { %v40_v8 = vsub.s32 1, %v35_v6  ;;  %v303_v13 = vld [vmem:[%s437_s2 + $0x20] sm:$0xff]   ;;  %v305_v20 = vld [vmem:[%s437_s2 + $0x30] sm:$0xff]   ;;  %v306_v21 = vld [vmem:[%s437_s2 + $0x38] sm:$0xff]   ;;  %v36_v23 = vsub.s32 0, %v35_v6  ;;  %vm221_vm4 = vcmask 687104  }
   0x5   :  { %v307_v22 = vld [vmem:[%s437_s2 + $0x40] sm:$0xff]   ;;  %v308_v24 = vld [vmem:[%s437_s2 + $0x48] sm:$0xff]   ;;  %v309_v27 = vld [vmem:[%s437_s2 + $0x50] sm:$0xff]   ;;  %vm230_vm5 = vcmask 679936  }
   0x6   :  { %178 = vmatpush1.bf16.msra.mxu0 %v300_v2  ;;  %v41_v14 = vrot.slane %v32_v11, %v40_v8  ;;  %v56_v15 = vrot.slane %v280_v12, %v40_v8  ;;  %v37_v26 = vrot.slane %v32_v11, %v36_v23  ;;  %v52_v28 = vrot.slane %v280_v12, %v36_v23  ;;  %v310_v30 = vld [vmem:[%s437_s2 + $0x58] sm:$0xff]   ;;  %v311_v31 = vld [vmem:[%s437_s2 + $0x60] ss:$0 sps:$4 sm:$0xff]   ;;  %v27_v6 = vld [vmem:[%s440_s3 + $0x1] sm:$0x1] }
   0x7   :  { %179 = vmatprep.subr.bf16.mxu0 %v314_v0  ;;  %v173_v33 = vsel %vm171_vm2, %v311_v31, 0  ;;  %v281_v35 = vld [vmem:[%s440_s3] ss:$0 sm:$0xff]  ;;  %v257_v8 = vld [vmem:[%s440_s3 + $0x3] sm:$0x1] }
   0x8   :  { %v45_v16 = vmul.f32 %v41_v14, %v31_v10  ;;  %v44_v29 = vmul.f32 %v37_v26, %v30_v25  ;;  %v220_v56 = vld [vmem:[#allocation2] sm:$0x1]  ;;  %v232_v59 = vld [vmem:[#allocation2 + $0x1] sm:$0x1]  ;;  %v28_v10 = vld [vmem:[%s440_s3 + $0x2] sm:$0x1] }
   0xa   :  { %180 = vmatpush1.bf16.msra.mxu0 %v301_v5  ;;  %v60_v18 = vadd.f32 %v56_v15, %v45_v16  ;;  %v59_v32 = vadd.f32 %v52_v28, %v44_v29  ;;  %v258_v16 = vld [vmem:[%s440_s3 + $0x4] sm:$0x1] }
   0xb   :  { %181 = vmatprep.subr.bf16.mxu0 %v314_v0 }
   0xc   :  { %v62_v19 = vpack.c.bf16 %v60_v18, %v60_v18  ;;  %v61_v34 = vpack.c.bf16 %v59_v32, %v59_v32 }
   0xe   :  { %182 = vmatpush1.bf16.msra.mxu0 %v302_v7  ;;  %295 = vmatprep.mubr.msk.bf16.mxu0 %vm167_vm1, %v62_v19 }
   0xf   :  { %183 = vmatprep.subr.bf16.mxu0 %v314_v0 }
  0x12   :  { %184 = vmatpush1.bf16.msra.mxu0 %v303_v13 }
  0x13   :  { %185 = vmatprep.subr.bf16.mxu0 %v314_v0 }
  0x16   :  { %186 = vmatpush1.bf16.msra.mxu0 %v304_v17 }
  0x17   :  { %187 = vmatprep.subr.bf16.mxu0 %v314_v0 }
  0x1a   :  { %188 = vmatpush1.bf16.msra.mxu0 %v305_v20 }
  0x1b   :  { %189 = vmatprep.subr.bf16.mxu0 %v314_v0 }
  0x1e   :  { %190 = vmatpush1.bf16.msra.mxu0 %v306_v21 }
  0x1f   :  { %191 = vmatprep.subr.bf16.mxu0 %v314_v0 }
  0x22   :  { %192 = vmatpush1.bf16.msra.mxu0 %v307_v22 }
  0x23   :  { %193 = vmatprep.subr.bf16.mxu0 %v314_v0 }
  0x26   :  { %194 = vmatpush1.bf16.msra.mxu0 %v308_v24 }
  0x27   :  { %195 = vmatprep.subr.bf16.mxu0 %v314_v0 }
  0x2a   :  { %196 = vmatpush1.bf16.msra.mxu0 %v309_v27 }
  0x2b   :  { %197 = vmatprep.subr.bf16.mxu0 %v314_v0 }
  0x2e   :  { %198 = vmatpush1.bf16.msra.mxu0 %v310_v30 }
  0x2f   :  { %199 = vmatprep.subr.bf16.mxu0 %v314_v0 }
  0x32   :  { %200 = vmatpush1.bf16.msra.mxu0 %v173_v33 }
  0x35   :  { %208 = vmatmul.mubr.bf16.vlgmr.msra.gmra.mrb[0].mxu0 %v61_v34 }
 0x108   :  { %v209_v36 = vpop.f32.mrb[0].mxu0 }
 0x109   :  { %v210_v37 = vadd.f32 %v281_v35, %v209_v36  ;;  %v211_v38 = vpop.f32.mrb[1].mxu0 }
 0x10a   :  { %v212_v39 = vpop.f32.mrb[2].mxu0 }
 0x10b   :  { %v215_v40 = vmax.f32 %v210_v37, 0.0  ;;  %v213_v41 = vpop.f32.mrb[3].mxu0 }
 0x10d   :  { %v216_v42 = vpack.c.bf16 %v215_v40, %v215_v40 }
 0x10f   :  { %218 = vst.msk [vmem:[%s441_s4] sm:$0xf] %vm217_vm3, %v216_v42  ;;  %v219_v43 = vunpack.c.l.bf16 %v216_v42 }
 0x111   :  { %v222_v44 = vsel %vm221_vm4, %v219_v43, 0.0  ;;  %v233_v45 = vmul.f32 %v219_v43, %v219_v43 }
 0x112   :  { %v223_v46 = vrot.slane %v222_v44, 4 }
 0x113   :  { %v234_v47 = vsel %vm221_vm4, %v233_v45, 0.0 }
 0x114   :  { %v224_v48 = vadd.f32 %v223_v46, %v222_v44  ;;  %v235_v49 = vrot.slane %v234_v47, 4 }
 0x116   :  { %v225_v50 = vrot.slane %v224_v48, 2  ;;  %v236_v51 = vadd.f32 %v235_v49, %v234_v47 }
 0x118   :  { %v226_v52 = vadd.f32 %v225_v50, %v224_v48  ;;  %v237_v53 = vrot.slane %v236_v51, 2 }
 0x11a   :  { %v227_v54 = vrot.slane %v226_v52, 1  ;;  %v238_v55 = vadd.f32 %v237_v53, %v236_v51 }
 0x11c   :  { %v228_v57 = vadd.f32 %v227_v54, %v226_v52  ;;  %v239_v58 = vrot.slane %v238_v55, 1 }
 0x11e   :  { %v229_v60 = vadd.f32 %v228_v57, %v220_v56  ;;  %v240_v61 = vadd.f32 %v239_v58, %v238_v55 }
 0x120   :  { %v241_v62 = vadd.f32 %v240_v61, %v232_v59  ;;  %231 = vst.msk [vmem:[#allocation2] sm:$0x1] %vm230_vm5, %v229_v60 }
 0x122   :  { %242 = vst.msk [vmem:[#allocation2 + $0x1] sm:$0x1] %vm230_vm5, %v241_v62 }
 0x127   :  { %v246_v63 = vld [vmem:[#allocation2] sm:$0x1] }
 0x128   :  { %v247_v0 = vmul.f32 0.125, %v246_v63 }
 0x129   :  { %v248_v1 = vld [vmem:[#allocation2 + $0x1] sm:$0x1] }
 0x12a   :  { %v249_v2 = vmul.f32 0.125, %v248_v1  ;;  %v250_v3 = vmul.f32 %v247_v0, %v247_v0 }
 0x12c   :  { %v251_v4 = vsub.f32 %v249_v2, %v250_v3 }
 0x12e   :  { %v252_v5 = vadd.f32 1e-05, %v251_v4 }
 0x130   :  { %312 = vrsqrt.f32 %v252_v5 }
 0x13a   :  { %v313_v7 = vpop.eup %312 }
 0x13b   :  { %v254_v9 = vmul.f32 %v313_v7, %v27_v6 }
 0x13d   :  { %v255_v11 = vmul.f32 %v254_v9, %v247_v0  ;;  %v259_v12 = vmul.f32 %v257_v8, %v254_v9 }
 0x13f   :  { %v256_v13 = vsub.f32 %v28_v10, %v255_v11  ;;  %260 = vst.msk [vmem:[%s442_s5] sm:$0x1] %vm230_vm5, %v259_v12 }
 0x141   :  { %v261_v14 = vmul.f32 %v257_v8, %v256_v13 }
 0x143   :  { %v262_v15 = vsel %vm230_vm5, %v261_v14, 0.0 }
 0x144   :  { %263 = vadd.xlane.f32.xlu0 %v262_v15 }
 0x1d1   :  { %v264_v17 = vpop.xlane.xlu0 %263 }
 0x1d2   :  { %v265_v18 = vadd.f32 %v264_v17, %v258_v16 }
 0x1d4   :  { %268 = vperm.xlu0 %298, %v265_v18  }
 0x253   :  { %v269_v19 = vpop.permute.xlu0 %268 }
 0x254   :  { %271 = vst.msk [vmem:[%s442_s5 + $0x1] sm:$0x1] %vm230_vm5, %v269_v19 }

</bundles_post_ra>
